<compile_context>
chip_gen: v6e
topology: v6e:2x2x1
jax: 0.10.0
libtpu: 0.0.40
codegen_flags: <defaults>
</compile_context>

<pallas_src>
import functools

import jax
import jax.numpy as jnp
from jax import lax
from jax.experimental import pallas as pl
from jax.experimental.pallas import tpu as pltpu


# ---------------------------------------------------------------------------
# Fused Pallas kernel (time-MLP + conv1 + hidden GCN layers + pool + output)
# ---------------------------------------------------------------------------

def _make_fused_kernel(num_hidden, strip, num_strips):
    def kernel(a_hbm_ref, x_ref, t_ref, tw_ref, tb_ref, w1_ref, b1_ref,
               wh_ref, bh_ref, p_ref, wo_ref, bo_ref, o_ref,
               a_vmem, h_vmem, dma_sem):

        # Row-strip DMA descriptor for A_hat (bf16), double-buffered semaphores.
        def a_strip_copy(s):  # s is a static Python int
            rows = pl.ds(s * strip, strip)
            return pltpu.make_async_copy(a_hbm_ref.at[rows, :],
                                         a_vmem.at[rows, :],
                                         dma_sem.at[s % 2])

        # Prime up to two strips; they overlap with the A-independent matmuls.
        a_strip_copy(0).start()
        if num_strips > 1:
            a_strip_copy(1).start()

        # --- time MLP (bf16 operands, f32 accumulation) ----------------------
        t_emb = jnp.maximum(
            jnp.dot(t_ref[...], tw_ref[...], preferred_element_type=jnp.float32)
            + tb_ref[...],
            0.0,
        )

        # --- conv1 feature transform X @ W1 (also independent of A) ----------
        xw = jnp.dot(x_ref[...], w1_ref[...],
                     preferred_element_type=jnp.float32).astype(jnp.bfloat16)

        # --- conv1 aggregation, strip-pipelined against the A_hat DMA --------
        for s in range(num_strips):           # static, small trip count
            a_strip_copy(s).wait()
            if s + 2 < num_strips:
                a_strip_copy(s + 2).start()
            lo, hi = s * strip, (s + 1) * strip
            h0 = jnp.dot(a_vmem[lo:hi, :], xw,
                         preferred_element_type=jnp.float32) + b1_ref[...]
            h_vmem[lo:hi, :] = (jnp.maximum(h0, 0.0)
                                + t_emb[lo:hi, :]).astype(jnp.bfloat16)

        # --- hidden GCN layers: A and h stay resident in VMEM ----------------
        # fori_loop bounds per-layer live ranges (one hw/h_new pair at a time).
        if num_hidden > 0:
            def layer(l, carry):
                hw = jnp.dot(h_vmem[...], wh_ref[l],
                             preferred_element_type=jnp.float32)
                h_new = jnp.dot(a_vmem[...], hw.astype(jnp.bfloat16),
                                preferred_element_type=jnp.float32) + bh_ref[l]
                h_vmem[...] = jnp.maximum(h_new, 0.0).astype(jnp.bfloat16)
                return carry
            lax.fori_loop(0, num_hidden, layer, 0)

        # --- global mean pool + output Linear ---------------------------------
        pooled = jnp.dot(p_ref[...], h_vmem[...],
                         preferred_element_type=jnp.float32)
        o_ref[...] = jnp.dot(pooled.astype(jnp.bfloat16), wo_ref[...],
                             preferred_element_type=jnp.float32) + bo_ref[...]

    return kernel


# ---------------------------------------------------------------------------
# Plain-JAX glue: normalized adjacency, mean-pool matrix, padding, init
# ---------------------------------------------------------------------------

def _round_up(n, m):
    return ((n + m - 1) // m) * m


def _pad2d(a, rows, cols, dtype=None):
    a = jnp.pad(a, ((0, rows - a.shape[0]), (0, cols - a.shape[1])))
    return a.astype(dtype) if dtype is not None else a


def build_norm_adj(edge_index, num_nodes):
    """Dense GCN-normalized adjacency with self loops.

    PyG convention: edge_index[0] = source, edge_index[1] = target.
    A_hat[dst, src] = 1/sqrt(deg(dst) * deg(src)), degrees counted after adding
    self loops.
    """
    src = edge_index[0]
    dst = edge_index[1]
    loops = jnp.arange(num_nodes, dtype=src.dtype)
    src = jnp.concatenate([src, loops])
    dst = jnp.concatenate([dst, loops])
    deg = jnp.zeros((num_nodes,), jnp.float32).at[dst].add(1.0)
    dinv = 1.0 / jnp.sqrt(deg)  # deg >= 1 thanks to self loops
    norm = dinv[src] * dinv[dst]
    A = jnp.zeros((num_nodes, num_nodes), jnp.float32).at[dst, src].add(norm)
    return A


def build_pool_matrix(batch, num_graphs):
    """[G, N] matrix implementing global_mean_pool."""
    onehot = (batch[None, :] == jnp.arange(num_graphs)[:, None]).astype(jnp.float32)
    counts = onehot.sum(axis=1, keepdims=True)
    return onehot / jnp.maximum(counts, 1.0)


def init_params(key, nfeatures, ntargets, nlayers, hidden_size, time_embedding_dim):
    """Deterministic synthetic parameters (shapes match the PyTorch module)."""
    keys = jax.random.split(key, 4 + 2 * (nlayers - 1) + 2)
    ki = iter(keys)

    def lin(k, fan_in, fan_out):
        scale = 1.0 / jnp.sqrt(jnp.float32(fan_in))
        return jax.random.uniform(k, (fan_in, fan_out), jnp.float32, -scale, scale)

    params = {}
    params["time_w"] = lin(next(ki), time_embedding_dim, hidden_size)
    params["time_b"] = jnp.zeros((1, hidden_size), jnp.float32)
    params["conv1_w"] = lin(next(ki), nfeatures, hidden_size)
    params["conv1_b"] = jnp.zeros((1, hidden_size), jnp.float32)
    params["convs"] = []
    for _ in range(nlayers - 1):
        w = lin(next(ki), hidden_size, hidden_size)
        b = jnp.zeros((1, hidden_size), jnp.float32)
        params["convs"].append((w, b))
    params["out_w"] = lin(next(ki), hidden_size, ntargets)
    params["out_b"] = jnp.zeros((1, ntargets), jnp.float32)
    return params


# ---------------------------------------------------------------------------
# Forward pass
# ---------------------------------------------------------------------------

@functools.partial(jax.jit, static_argnames=("num_graphs",))
def gnn_forward(params, x, edge_index, t_embedding, batch, num_graphs):
    n, nfeat = x.shape
    hidden = params["conv1_w"].shape[1]
    tdim = params["time_w"].shape[0]
    ntargets = params["out_w"].shape[1]
    num_hidden = len(params["convs"])

    # lane / MXU-friendly padded sizes
    NP = _round_up(n, 128)
    FP = _round_up(nfeat, 128)
    HP = _round_up(hidden, 128)
    TP = _round_up(tdim, 128)
    OP = _round_up(ntargets, 128)
    GP = _round_up(num_graphs, 8)

    # A_hat row-strip size for the pipelined load (must divide NP; NP % 128 == 0)
    strip = 128
    for cand in (1024, 512, 256, 128):
        if NP % cand == 0:
            strip = cand
            break
    num_strips = NP // strip

    # ---- glue: adjacency, pool matrix, t broadcast, zero padding -----------
    A = build_norm_adj(edge_index, n)
    P = build_pool_matrix(batch, num_graphs)

    # Module semantics: t_emb is added per node. Accept either a per-node
    # [N, T] embedding (literal module behaviour) or a per-graph [G, T]
    # embedding, which we expand with `batch` before the kernel.
    if t_embedding.shape[0] == n:
        t_nodes = t_embedding
    else:
        t_nodes = t_embedding[batch]

    bf16 = jnp.bfloat16
    # Correctness of padding relies on A_hat's / P's padded columns being zero
    # (padded node rows carry relu(bias)+relu(time-bias) but are never pooled).
    a_p = _pad2d(A, NP, NP, bf16)          # bf16 operands, f32 accumulation
    x_p = _pad2d(x, NP, FP, bf16)
    t_p = _pad2d(t_nodes, NP, TP, bf16)
    p_p = _pad2d(P, GP, NP, bf16)

    tw = _pad2d(params["time_w"], TP, HP, bf16)
    tb = _pad2d(params["time_b"], 1, HP)                 # biases stay f32
    w1 = _pad2d(params["conv1_w"], FP, HP, bf16)
    b1 = _pad2d(params["conv1_b"], 1, HP)
    wo = _pad2d(params["out_w"], HP, OP, bf16)
    bo = _pad2d(params["out_b"], 1, OP)

    if num_hidden > 0:
        wh = jnp.stack([_pad2d(w, HP, HP, bf16) for w, _ in params["convs"]])
        bh = jnp.stack([_pad2d(b, 1, HP) for _, b in params["convs"]])
    else:  # minimal never-read dummy (layer loop is statically skipped)
        wh = jnp.zeros((1, 8, 128), bf16)
        bh = jnp.zeros((1, 1, 128), jnp.float32)

    # ---- scheduler hints ------------------------------------------------------
    flops = 2 * (NP * TP * HP + NP * FP * HP + NP * NP * HP
                 + num_hidden * (NP * HP * HP + NP * NP * HP)
                 + GP * NP * HP + GP * HP * OP)

    def nbytes(a):
        return a.size * a.dtype.itemsize

    operand_bytes = sum(nbytes(a) for a in
                        (a_p, x_p, t_p, p_p, tw, tb, w1, b1, wh, bh, wo, bo))
    out_bytes = GP * OP * 4
    bytes_io = operand_bytes + out_bytes

    # True VMEM residency: scratch (A + h) + single-buffered inputs + output
    # + ~one layer of f32 temporaries (t_emb / xw / hw / h_new).
    residency = (NP * NP * 2 + NP * HP * 2          # a_vmem (bf16), h_vmem (bf16)
                 + operand_bytes + out_bytes
                 + 4 * NP * HP * 4)
    try:
        phys_vmem = int(pltpu.get_tpu_info().vmem_capacity_bytes)
    except Exception:
        phys_vmem = 64 * 1024 * 1024                # conservative (v7x)
    headroom = 2 * 1024 * 1024
    if residency > phys_vmem - headroom:
        # TODO(synk): stream A_hat row-strips per layer / sparse segment-sum path.
        raise NotImplementedError(
            "graph too large for resident-A kernel on this TPU generation")
    vmem_limit = int(min(max(int(residency * 1.25) + (2 << 20), 32 << 20),
                         phys_vmem - headroom))

    vmem = pltpu.MemorySpace.VMEM
    out_pad = pl.pallas_call(
        _make_fused_kernel(num_hidden, strip, num_strips),
        out_shape=jax.ShapeDtypeStruct((GP, OP), jnp.float32),
        in_specs=[pl.BlockSpec(memory_space=pl.ANY)]        # A_hat: stays in HBM,
                 + [pl.BlockSpec(memory_space=vmem)] * 11,  # strip-DMA'd once
        out_specs=pl.BlockSpec(memory_space=vmem),
        scratch_shapes=[
            pltpu.VMEM((NP, NP), jnp.bfloat16),   # resident A_hat
            pltpu.VMEM((NP, HP), jnp.bfloat16),   # resident h (carried over layers)
            pltpu.SemaphoreType.DMA((2,)),        # double-buffered strip DMA
        ],
        compiler_params=pltpu.CompilerParams(vmem_limit_bytes=vmem_limit),
        cost_estimate=pl.CostEstimate(flops=int(flops), transcendentals=0,
                                      bytes_accessed=int(bytes_io)),
    )(a_p, x_p, t_p, tw, tb, w1, b1, wh, bh, p_p, wo, bo)

    return out_pad[:num_graphs, :ntargets]


# ---------------------------------------------------------------------------
# Pure-JAX reference (module semantics, full f32) for validation
# ---------------------------------------------------------------------------

def gnn_reference(params, x, edge_index, t_embedding, batch, num_graphs):
    A = build_norm_adj(edge_index, x.shape[0])
    P = build_pool_matrix(batch, num_graphs)
    t_nodes = t_embedding if t_embedding.shape[0] == x.shape[0] else t_embedding[batch]
    t_emb = jax.nn.relu(t_nodes @ params["time_w"] + params["time_b"])
    h = jax.nn.relu(A @ (x @ params["conv1_w"]) + params["conv1_b"]) + t_emb
    for w, b in params["convs"]:
        h = jax.nn.relu(A @ (h @ w) + b)
    return (P @ h) @ params["out_w"] + params["out_b"]


# ---------------------------------------------------------------------------
# Demo
# ---------------------------------------------------------------------------

if __name__ == "__main__":
    key = jax.random.PRNGKey(0)
    k_param, k_x, k_edge, k_t = jax.random.split(key, 4)

    # small synthetic problem
    N_NODES = 16
    N_FEATURES = 8
    N_TARGETS = 4
    N_LAYERS = 3
    HIDDEN = 32
    TIME_DIM = 128
    N_GRAPHS = 2
    N_EDGES = 32

    params = init_params(k_param, N_FEATURES, N_TARGETS, N_LAYERS, HIDDEN, TIME_DIM)

    x = jax.random.normal(k_x, (N_NODES, N_FEATURES), jnp.float32)
    edge_index = jax.random.randint(k_edge, (2, N_EDGES), 0, N_NODES, jnp.int32)
    # per-node time embedding (literal module behaviour for the `h + t_emb` add)
    t_embedding = jax.random.normal(k_t, (N_NODES, TIME_DIM), jnp.float32)
    # first half of nodes -> graph 0, second half -> graph 1
    batch = jnp.concatenate(
        [jnp.zeros((N_NODES // 2,), jnp.int32), jnp.ones((N_NODES // 2,), jnp.int32)]
    )

    out = gnn_forward(params, x, edge_index, t_embedding, batch, N_GRAPHS)
    out = jax.block_until_ready(out)

    ref = gnn_reference(params, x, edge_index, t_embedding, batch, N_GRAPHS)

    assert out.shape == (N_GRAPHS, N_TARGETS)
    assert jnp.all(jnp.isfinite(out))
    # bf16 operands / resident h with f32 accumulation -> loose tolerance
    assert float(jnp.max(jnp.abs(out - ref))) < 1e-1
    print("KERNEL_OK")
</pallas_src>

<mosaic_0001>
module attributes {stable_mosaic.version = 11 : i64} {
  func.func private @main(%arg0: i32) attributes {dimension_semantics = [#tpu.dimension_semantics<core_parallel>], iteration_bounds = array<i64: 2>, tpu.core_type = #tpu.core_type<sc_scalar_subcore>, window_params = []} {
    return
  }
}

module attributes {stable_mosaic.version = 11 : i64} {
  func.func private @main(%arg0: i32) attributes {dimension_semantics = [#tpu.dimension_semantics<core_parallel>], iteration_bounds = array<i64: 2>, tpu.core_type = #tpu.core_type<sc_scalar_subcore>, window_params = []} {
    return
  }
}

module attributes {stable_mosaic.version = 11 : i64} {
  func.func @kernel(%arg0: memref<128x128xbf16, #tpu.memory_space<any>>, %arg1: memref<128x128xbf16, #tpu.memory_space<vmem>>, %arg2: memref<128x128xbf16, #tpu.memory_space<vmem>>, %arg3: memref<128x128xbf16, #tpu.memory_space<vmem>>, %arg4: memref<1x128xf32, #tpu.memory_space<vmem>>, %arg5: memref<128x128xbf16, #tpu.memory_space<vmem>>, %arg6: memref<1x128xf32, #tpu.memory_space<vmem>>, %arg7: memref<2x128x128xbf16, #tpu.memory_space<vmem>>, %arg8: memref<2x1x128xf32, #tpu.memory_space<vmem>>, %arg9: memref<8x128xbf16, #tpu.memory_space<vmem>>, %arg10: memref<128x128xbf16, #tpu.memory_space<vmem>>, %arg11: memref<1x128xf32, #tpu.memory_space<vmem>>, %arg12: memref<8x128xf32, #tpu.memory_space<vmem>>, %arg13: memref<128x128xbf16, #tpu.memory_space<vmem>>, %arg14: memref<128x128xbf16, #tpu.memory_space<vmem>>, %arg15: memref<2x!tpu.dma_semaphore, #tpu.memory_space<semaphore_mem>>) attributes {dimension_semantics = [], scalar_prefetch = 0 : i64, scratch_operands = 3 : i64, tpu.core_type = #tpu.core_type<tc>} {
    %c0_i32 = arith.constant 0 : i32
    %c0_i32_0 = arith.constant 0 : i32
    %c0_i32_1 = arith.constant 0 : i32
    %0 = tpu.memref_slice %arg0[%c0_i32_0, %c0_i32_1] : memref<128x128xbf16, #tpu.memory_space<any>> -> memref<128x128xbf16, #tpu.memory_space<any>>
    %c0_i32_2 = arith.constant 0 : i32
    %c0_i32_3 = arith.constant 0 : i32
    %1 = tpu.memref_slice %arg13[%c0_i32_2, %c0_i32_3] : memref<128x128xbf16, #tpu.memory_space<vmem>> -> memref<128x128xbf16, #tpu.memory_space<vmem>>
    %2 = tpu.memref_slice %arg15[%c0_i32] : memref<2x!tpu.dma_semaphore, #tpu.memory_space<semaphore_mem>> -> memref<1x!tpu.dma_semaphore, #tpu.memory_space<semaphore_mem>>
    %3 = tpu.memref_squeeze %2 : memref<1x!tpu.dma_semaphore, #tpu.memory_space<semaphore_mem>> -> memref<!tpu.dma_semaphore, #tpu.memory_space<semaphore_mem>>
    tpu.enqueue_dma source(%0 : memref<128x128xbf16, #tpu.memory_space<any>>) target(%1 : memref<128x128xbf16, #tpu.memory_space<vmem>>) target_semaphore(%3 : memref<!tpu.dma_semaphore, #tpu.memory_space<semaphore_mem>>)
    %c0 = arith.constant 0 : index
    %c0_4 = arith.constant 0 : index
    %4 = vector.load %arg2[%c0, %c0_4] : memref<128x128xbf16, #tpu.memory_space<vmem>>, vector<128x128xbf16>
    %c0_5 = arith.constant 0 : index
    %c0_6 = arith.constant 0 : index
    %5 = vector.load %arg3[%c0_5, %c0_6] : memref<128x128xbf16, #tpu.memory_space<vmem>>, vector<128x128xbf16>
    %cst = arith.constant dense<0.000000e+00> : vector<128x128xf32>
    %6 = tpu.matmul %4, %5, %cst {dimension_numbers = #tpu.dot_dimension_numbers<[1], [0], [0], [1], [0, 0, 1, 1], [], []>} : vector<128x128xbf16>, vector<128x128xbf16>, vector<128x128xf32> -> vector<128x128xf32>
    %c0_7 = arith.constant 0 : index
    %c0_8 = arith.constant 0 : index
    %7 = vector.load %arg4[%c0_7, %c0_8] : memref<1x128xf32, #tpu.memory_space<vmem>>, vector<1x128xf32>
    %8 = vector.broadcast %7 : vector<1x128xf32> to vector<128x128xf32>
    %9 = arith.addf %6, %8 : vector<128x128xf32>
    %cst_9 = arith.constant 0.000000e+00 : f32
    %10 = vector.broadcast %cst_9 : f32 to vector<128x128xf32>
    %11 = arith.maximumf %9, %10 : vector<128x128xf32>
    %c0_10 = arith.constant 0 : index
    %c0_11 = arith.constant 0 : index
    %12 = vector.load %arg1[%c0_10, %c0_11] : memref<128x128xbf16, #tpu.memory_space<vmem>>, vector<128x128xbf16>
    %c0_12 = arith.constant 0 : index
    %c0_13 = arith.constant 0 : index
    %13 = vector.load %arg5[%c0_12, %c0_13] : memref<128x128xbf16, #tpu.memory_space<vmem>>, vector<128x128xbf16>
    %cst_14 = arith.constant dense<0.000000e+00> : vector<128x128xf32>
    %14 = tpu.matmul %12, %13, %cst_14 {dimension_numbers = #tpu.dot_dimension_numbers<[1], [0], [0], [1], [0, 0, 1, 1], [], []>} : vector<128x128xbf16>, vector<128x128xbf16>, vector<128x128xf32> -> vector<128x128xf32>
    %15 = arith.truncf %14 : vector<128x128xf32> to vector<128x128xbf16>
    %c0_i32_15 = arith.constant 0 : i32
    %c0_i32_16 = arith.constant 0 : i32
    %c0_i32_17 = arith.constant 0 : i32
    %16 = tpu.memref_slice %arg0[%c0_i32_16, %c0_i32_17] : memref<128x128xbf16, #tpu.memory_space<any>> -> memref<128x128xbf16, #tpu.memory_space<any>>
    %c0_i32_18 = arith.constant 0 : i32
    %c0_i32_19 = arith.constant 0 : i32
    %17 = tpu.memref_slice %arg13[%c0_i32_18, %c0_i32_19] : memref<128x128xbf16, #tpu.memory_space<vmem>> -> memref<128x128xbf16, #tpu.memory_space<vmem>>
    %18 = tpu.memref_slice %arg15[%c0_i32_15] : memref<2x!tpu.dma_semaphore, #tpu.memory_space<semaphore_mem>> -> memref<1x!tpu.dma_semaphore, #tpu.memory_space<semaphore_mem>>
    %19 = tpu.memref_squeeze %18 : memref<1x!tpu.dma_semaphore, #tpu.memory_space<semaphore_mem>> -> memref<!tpu.dma_semaphore, #tpu.memory_space<semaphore_mem>>
    tpu.wait_dma2 semaphore(%19 : memref<!tpu.dma_semaphore, #tpu.memory_space<semaphore_mem>>) src(%16 : memref<128x128xbf16, #tpu.memory_space<any>>) dst(%17 : memref<128x128xbf16, #tpu.memory_space<vmem>>)
    %c0_20 = arith.constant 0 : index
    %c0_21 = arith.constant 0 : index
    %20 = vector.load %arg13[%c0_20, %c0_21] : memref<128x128xbf16, #tpu.memory_space<vmem>>, vector<128x128xbf16>
    %cst_22 = arith.constant dense<0.000000e+00> : vector<128x128xf32>
    %21 = tpu.matmul %20, %15, %cst_22 {dimension_numbers = #tpu.dot_dimension_numbers<[1], [0], [0], [1], [0, 0, 1, 1], [], []>} : vector<128x128xbf16>, vector<128x128xbf16>, vector<128x128xf32> -> vector<128x128xf32>
    %c0_23 = arith.constant 0 : index
    %c0_24 = arith.constant 0 : index
    %22 = vector.load %arg6[%c0_23, %c0_24] : memref<1x128xf32, #tpu.memory_space<vmem>>, vector<1x128xf32>
    %23 = vector.broadcast %22 : vector<1x128xf32> to vector<128x128xf32>
    %24 = arith.addf %21, %23 : vector<128x128xf32>
    %cst_25 = arith.constant 0.000000e+00 : f32
    %25 = vector.broadcast %cst_25 : f32 to vector<128x128xf32>
    %26 = arith.maximumf %24, %25 : vector<128x128xf32>
    %27 = arith.addf %26, %11 : vector<128x128xf32>
    %28 = arith.truncf %27 : vector<128x128xf32> to vector<128x128xbf16>
    %c0_26 = arith.constant 0 : index
    %c0_27 = arith.constant 0 : index
    %29 = vector.load %arg14[%c0_26, %c0_27] : memref<128x128xbf16, #tpu.memory_space<vmem>>, vector<128x128xbf16>
    tpu.vector_store %arg14[%c0_26, %c0_27], %28 {strides = array<i32>} : memref<128x128xbf16, #tpu.memory_space<vmem>>, vector<128x128xbf16>,
    %c0_i32_28 = arith.constant 0 : i32
    %c2_i32 = arith.constant 2 : i32
    %30 = arith.addi %c0_i32_28, %c2_i32 : i32
    %c1_i32 = arith.constant 1 : i32
    scf.for %arg16 = %c0_i32_28 to %30 step %c1_i32  : i32 {
      %c0_42 = arith.constant 0 : index
      %c0_43 = arith.constant 0 : index
      %41 = vector.load %arg14[%c0_42, %c0_43] : memref<128x128xbf16, #tpu.memory_space<vmem>>, vector<128x128xbf16>
      %42 = arith.index_cast %arg16 : i32 to index
      %c0_44 = arith.constant 0 : index
      %c0_45 = arith.constant 0 : index
      %43 = vector.load %arg7[%42, %c0_44, %c0_45] : memref<2x128x128xbf16, #tpu.memory_space<vmem>>, vector<1x128x128xbf16>
      %44 = vector.shape_cast %43 : vector<1x128x128xbf16> to vector<128x128xbf16>
      %cst_46 = arith.constant dense<0.000000e+00> : vector<128x128xf32>
      %45 = tpu.matmul %41, %44, %cst_46 {dimension_numbers = #tpu.dot_dimension_numbers<[1], [0], [0], [1], [0, 0, 1, 1], [], []>} : vector<128x128xbf16>, vector<128x128xbf16>, vector<128x128xf32> -> vector<128x128xf32>
      %c0_47 = arith.constant 0 : index
      %c0_48 = arith.constant 0 : index
      %46 = vector.load %arg13[%c0_47, %c0_48] : memref<128x128xbf16, #tpu.memory_space<vmem>>, vector<128x128xbf16>
      %47 = arith.truncf %45 : vector<128x128xf32> to vector<128x128xbf16>
      %cst_49 = arith.constant dense<0.000000e+00> : vector<128x128xf32>
      %48 = tpu.matmul %46, %47, %cst_49 {dimension_numbers = #tpu.dot_dimension_numbers<[1], [0], [0], [1], [0, 0, 1, 1], [], []>} : vector<128x128xbf16>, vector<128x128xbf16>, vector<128x128xf32> -> vector<128x128xf32>
      %49 = arith.index_cast %arg16 : i32 to index
      %c0_50 = arith.constant 0 : index
      %c0_51 = arith.constant 0 : index
      %50 = vector.load %arg8[%49, %c0_50, %c0_51] : memref<2x1x128xf32, #tpu.memory_space<vmem>>, vector<1x1x128xf32>
      %51 = vector.shape_cast %50 : vector<1x1x128xf32> to vector<1x128xf32>
      %52 = vector.broadcast %51 : vector<1x128xf32> to vector<128x128xf32>
      %53 = arith.addf %48, %52 : vector<128x128xf32>
      %cst_52 = arith.constant 0.000000e+00 : f32
      %54 = vector.broadcast %cst_52 : f32 to vector<128x128xf32>
      %55 = arith.maximumf %53, %54 : vector<128x128xf32>
      %56 = arith.truncf %55 : vector<128x128xf32> to vector<128x128xbf16>
      %c0_53 = arith.constant 0 : index
      %c0_54 = arith.constant 0 : index
      %57 = vector.load %arg14[%c0_53, %c0_54] : memref<128x128xbf16, #tpu.memory_space<vmem>>, vector<128x128xbf16>
      tpu.vector_store %arg14[%c0_53, %c0_54], %56 {strides = array<i32>} : memref<128x128xbf16, #tpu.memory_space<vmem>>, vector<128x128xbf16>,
    }
    %c2_i32_29 = arith.constant 2 : i32
    %c0_30 = arith.constant 0 : index
    %c0_31 = arith.constant 0 : index
    %31 = vector.load %arg9[%c0_30, %c0_31] : memref<8x128xbf16, #tpu.memory_space<vmem>>, vector<8x128xbf16>
    %c0_32 = arith.constant 0 : index
    %c0_33 = arith.constant 0 : index
    %32 = vector.load %arg14[%c0_32, %c0_33] : memref<128x128xbf16, #tpu.memory_space<vmem>>, vector<128x128xbf16>
    %cst_34 = arith.constant dense<0.000000e+00> : vector<8x128xf32>
    %33 = tpu.matmul %31, %32, %cst_34 {dimension_numbers = #tpu.dot_dimension_numbers<[1], [0], [0], [1], [0, 0, 1, 1], [], []>} : vector<8x128xbf16>, vector<128x128xbf16>, vector<8x128xf32> -> vector<8x128xf32>
    %34 = arith.truncf %33 : vector<8x128xf32> to vector<8x128xbf16>
    %c0_35 = arith.constant 0 : index
    %c0_36 = arith.constant 0 : index
    %35 = vector.load %arg10[%c0_35, %c0_36] : memref<128x128xbf16, #tpu.memory_space<vmem>>, vector<128x128xbf16>
    %cst_37 = arith.constant dense<0.000000e+00> : vector<8x128xf32>
    %36 = tpu.matmul %34, %35, %cst_37 {dimension_numbers = #tpu.dot_dimension_numbers<[1], [0], [0], [1], [0, 0, 1, 1], [], []>} : vector<8x128xbf16>, vector<128x128xbf16>, vector<8x128xf32> -> vector<8x128xf32>
    %c0_38 = arith.constant 0 : index
    %c0_39 = arith.constant 0 : index
    %37 = vector.load %arg11[%c0_38, %c0_39] : memref<1x128xf32, #tpu.memory_space<vmem>>, vector<1x128xf32>
    %38 = vector.broadcast %37 : vector<1x128xf32> to vector<8x128xf32>
    %39 = arith.addf %36, %38 : vector<8x128xf32>
    %c0_40 = arith.constant 0 : index
    %c0_41 = arith.constant 0 : index
    %40 = vector.load %arg12[%c0_40, %c0_41] : memref<8x128xf32, #tpu.memory_space<vmem>>, vector<8x128xf32>
    tpu.vector_store %arg12[%c0_40, %c0_41], %39 {strides = array<i32>} : memref<8x128xf32, #tpu.memory_space<vmem>>, vector<8x128xf32>,
    return
  }
}

</mosaic_0001>

<bundles_post_ra>
// kernel: mul.1
= control target key start
LH: loop header
LB: loop body
LE: loop exit
PB: predicated region body
PF: predicated region fallthrough
CT: control target
= control target key end

     0   :  { %s34_s0 = inlined_call_operand.vmem [shape: f32[48], index: 0, kind: input, shape index: {}]   ;;  %s35_s1 = inlined_call_operand.vmem [shape: f32[48], index: 1, kind: input, shape index: {}]   ;;  %s36_s2 = inlined_call_operand.vmem [shape: f32[48], index: 2, kind: output, shape index: {}]  }
   0x1   :  { %v3_v0 = vld [vmem:[%s34_s0] sm:$0x1] }
   0x2   :  { %v4_v1 = vld [vmem:[%s35_s1] sm:$0x1] }
   0x3   :  { %v7_v2 = vmul.f32 %v4_v1, %v3_v0 }
   0x5   :  { %9 = vst [vmem:[%s36_s2] sm:$0x1] %v7_v2 }

// kernel: gnn_forward.1
= control target key start
LH: loop header
LB: loop body
LE: loop exit
PB: predicated region body
PF: predicated region fallthrough
CT: control target
= control target key end

     0   :  { %s2645_s0 = inlined_call_operand.vmem [shape: bf16[128,128], index: 0, kind: input, shape index: {}]   ;;  %s2646_s1 = inlined_call_operand.vmem [shape: bf16[128,128], index: 1, kind: input, shape index: {}]   ;;  %s2647_s2 = inlined_call_operand.vmem [shape: bf16[128,128], index: 2, kind: input, shape index: {}]   ;;  %s2648_s3 = inlined_call_operand.vmem [shape: bf16[128,128], index: 3, kind: input, shape index: {}]   ;;  %s2649_s4 = inlined_call_operand.vmem [shape: f32[1,128], index: 4, kind: input, shape index: {}]   ;;  %s2650_s5 = inlined_call_operand.vmem [shape: bf16[128,128], index: 5, kind: input, shape index: {}]   ;;  %s2651_s6 = inlined_call_operand.vmem [shape: f32[1,128], index: 6, kind: input, shape index: {}]   ;;  %s2652_s7 = inlined_call_operand.vmem [shape: bf16[2,128,128], index: 7, kind: input, shape index: {}]   ;;  %s2653_s8 = inlined_call_operand.vmem [shape: f32[2,1,128], index: 8, kind: input, shape index: {}]   ;;  %s2654_s9 = inlined_call_operand.vmem [shape: bf16[8,128], index: 9, kind: input, shape index: {}]   ;;  %s2655_s10 = inlined_call_operand.vmem [shape: bf16[128,128], index: 10, kind: input, shape index: {}]   ;;  %s2656_s11 = inlined_call_operand.vmem [shape: f32[1,128], index: 11, kind: input, shape index: {}]   ;;  %s2657_s12 = inlined_call_operand.vmem [shape: f32[8,128], index: 12, kind: output, shape index: {}]  }
   0x1   :  { %v73_v0 = vld [vmem:[%s2645_s0] sm:$0xff]  ;;  %v75_v1 = vld [vmem:[%s2645_s0 + $0x8] sm:$0xff]  ;;  %v77_v2 = vld [vmem:[%s2645_s0 + $0x10] sm:$0xff] }
   0x2   :  { %74 = vst [vmem:[#allocation2] sm:$0xff] %v73_v0  ;;  %76 = vst [vmem:[#allocation2 + $0x8] sm:$0xff] %v75_v1  ;;  %v79_v3 = vld [vmem:[%s2645_s0 + $0x18] sm:$0xff]  ;;  %v81_v4 = vld [vmem:[%s2645_s0 + $0x20] sm:$0xff] }
   0x3   :  { %78 = vst [vmem:[#allocation2 + $0x10] sm:$0xff] %v77_v2  ;;  %v83_v5 = vld [vmem:[%s2645_s0 + $0x28] sm:$0xff]  ;;  %80 = vst [vmem:[#allocation2 + $0x18] sm:$0xff] %v79_v3  ;;  %v85_v6 = vld [vmem:[%s2645_s0 + $0x30] sm:$0xff] }
   0x4   :  { %82 = vst [vmem:[#allocation2 + $0x20] sm:$0xff] %v81_v4  ;;  %84 = vst [vmem:[#allocation2 + $0x28] sm:$0xff] %v83_v5  ;;  %v87_v7 = vld [vmem:[%s2645_s0 + $0x38] sm:$0xff] }
   0x5   :  { %86 = vst [vmem:[#allocation2 + $0x30] sm:$0xff] %v85_v6  ;;  %88 = vst [vmem:[#allocation2 + $0x38] sm:$0xff] %v87_v7 }
   0x6   :  { %96 = vsyncadd [#allocation4], 1024  ;;  %v2191_v8 = vld [vmem:[%s2648_s3 + $0x38] sm:$0xff]   ;;  %v2193_v10 = vld [vmem:[%s2648_s3 + $0x30] sm:$0xff]  }
   0x7   :  { %v2192_v9 = vld [vmem:[%s2650_s5 + $0x38] sm:$0xff]   ;;  %1965 = vmatprep.subr.bf16.mxu0 %v2191_v8  ;;  %v2194_v11 = vld [vmem:[%s2650_s5 + $0x30] sm:$0xff]   ;;  %v2195_v12 = vld [vmem:[%s2648_s3 + $0x28] sm:$0xff]  }
   0x8   :  { %1997 = vmatprep.subr.bf16.mxu1 %v2192_v9  ;;  %1966 = vmatpush3.bf16.msra.mxu0 %v2191_v8  ;;  %v2196_v13 = vld [vmem:[%s2650_s5 + $0x28] sm:$0xff]   ;;  %v2197_v14 = vld [vmem:[%s2648_s3 + $0x20] sm:$0xff]   ;;  %v2199_v16 = vld [vmem:[%s2648_s3 + $0x18] sm:$0xff]  }
   0x9   :  { %1998 = vmatpush3.bf16.msra.mxu1 %v2192_v9  ;;  %1967 = vmatprep.subr.bf16.mxu0 %v2193_v10  ;;  %v2198_v15 = vld [vmem:[%s2650_s5 + $0x20] sm:$0xff]   ;;  %v2200_v17 = vld [vmem:[%s2650_s5 + $0x18] sm:$0xff]   ;;  %v2201_v18 = vld [vmem:[%s2648_s3 + $0x10] sm:$0xff]  }
   0xa   :  { %1999 = vmatprep.subr.bf16.mxu1 %v2194_v11  ;;  %v2202_v19 = vld [vmem:[%s2650_s5 + $0x10] sm:$0xff]   ;;  %v2207_v20 = vld [vmem:[%s2647_s2] sm:$0xff]   ;;  %v2203_v22 = vld [vmem:[%s2648_s3 + $0x8] sm:$0xff]  }
   0xb   :  { %v2208_v21 = vld [vmem:[%s2646_s1] sm:$0xff]   ;;  %1981 = vmatprep.mubr.bf16.mxu0 %v2207_v20  ;;  %v2204_v23 = vld [vmem:[%s2650_s5 + $0x8] sm:$0xff]   ;;  %v2211_v28 = vld [vmem:[%s2647_s2 + $0x10] sm:$0xff]  }
   0xc   :  { %1968 = vmatpush3.bf16.msra.mxu0 %v2193_v10  ;;  %2013 = vmatprep.mubr.bf16.mxu1 %v2208_v21  ;;  %v2205_v24 = vld [vmem:[%s2648_s3] sm:$0xff]   ;;  %v2209_v26 = vld [vmem:[%s2647_s2 + $0x8] sm:$0xff]   ;;  %v2212_v29 = vld [vmem:[%s2646_s1 + $0x10] sm:$0xff]  }
   0xd   :  { %2000 = vmatpush3.bf16.msra.mxu1 %v2194_v11  ;;  %1969 = vmatprep.subr.bf16.mxu0 %v2195_v12  ;;  %v2206_v25 = vld [vmem:[%s2650_s5] sm:$0xff]   ;;  %v2210_v27 = vld [vmem:[%s2646_s1 + $0x8] sm:$0xff]   ;;  %v2213_v30 = vld [vmem:[%s2647_s2 + $0x18] sm:$0xff]  }
   0xe   :  { %2001 = vmatprep.subr.bf16.mxu1 %v2196_v13  ;;  %v2214_v31 = vld [vmem:[%s2646_s1 + $0x18] sm:$0xff]   ;;  %v2215_v32 = vld [vmem:[%s2647_s2 + $0x20] sm:$0xff]   ;;  %v2217_v34 = vld [vmem:[%s2647_s2 + $0x28] sm:$0xff]  }
   0xf   :  { %v2216_v33 = vld [vmem:[%s2646_s1 + $0x20] sm:$0xff]   ;;  %v2218_v35 = vld [vmem:[%s2646_s1 + $0x28] sm:$0xff]   ;;  %v2219_v36 = vld [vmem:[%s2647_s2 + $0x30] sm:$0xff]  }
  0x10   :  { %1970 = vmatpush3.bf16.msra.mxu0 %v2195_v12  ;;  %v2220_v37 = vld [vmem:[%s2646_s1 + $0x30] sm:$0xff]   ;;  %v2221_v38 = vld [vmem:[%s2647_s2 + $0x38] sm:$0xff]   ;;  %v2471_v40 = vld [vmem:[%s2649_s4] ss:$0 sm:$0xff] }
  0x11   :  { %2002 = vmatpush3.bf16.msra.mxu1 %v2196_v13  ;;  %1971 = vmatprep.subr.bf16.mxu0 %v2197_v14  ;;  %v2222_v39 = vld [vmem:[%s2646_s1 + $0x38] sm:$0xff]  }
  0x12   :  { %2003 = vmatprep.subr.bf16.mxu1 %v2198_v15 }
  0x14   :  { %1972 = vmatpush3.bf16.msra.mxu0 %v2197_v14 }
  0x15   :  { %2004 = vmatpush3.bf16.msra.mxu1 %v2198_v15  ;;  %1973 = vmatprep.subr.bf16.mxu0 %v2199_v16 }
  0x16   :  { %2005 = vmatprep.subr.bf16.mxu1 %v2200_v17 }
  0x18   :  { %1974 = vmatpush3.bf16.msra.mxu0 %v2199_v16 }
  0x19   :  { %2006 = vmatpush3.bf16.msra.mxu1 %v2200_v17  ;;  %1975 = vmatprep.subr.bf16.mxu0 %v2201_v18 }
  0x1a   :  { %2007 = vmatprep.subr.bf16.mxu1 %v2202_v19 }
  0x1c   :  { %1976 = vmatpush3.bf16.msra.mxu0 %v2201_v18 }
  0x1d   :  { %2008 = vmatpush3.bf16.msra.mxu1 %v2202_v19  ;;  %1977 = vmatprep.subr.bf16.mxu0 %v2203_v22 }
  0x1e   :  { %2009 = vmatprep.subr.bf16.mxu1 %v2204_v23 }
  0x20   :  { %1978 = vmatpush3.bf16.msra.mxu0 %v2203_v22 }
  0x21   :  { %2010 = vmatpush3.bf16.msra.mxu1 %v2204_v23  ;;  %1979 = vmatprep.subr.bf16.mxu0 %v2205_v24 }
  0x22   :  { %2011 = vmatprep.subr.bf16.mxu1 %v2206_v25 }
  0x24   :  { %1980 = vmatpush3.bf16.msra.mxu0 %v2205_v24 }
  0x25   :  { %2012 = vmatpush3.bf16.msra.mxu1 %v2206_v25 }
  0x27   :  { %1982 = vmatmul.mubr.bf16.vlgmr.msra.gmra.mxu0 %v2209_v26 }
  0x28   :  { %2014 = vmatmul.mubr.bf16.vlgmr.msra.gmra.mxu1 %v2210_v27  ;;  %1985 = vmatprep.mubr.bf16.mxu0 %v2211_v28 }
  0x29   :  { %2017 = vmatprep.mubr.bf16.mxu1 %v2212_v29 }
  0x2f   :  { %1986 = vmatmul.mubr.bf16.gmra.mxu0 %v2213_v30 }
  0x30   :  { %2018 = vmatmul.mubr.bf16.gmra.mxu1 %v2214_v31  ;;  %1989 = vmatprep.mubr.bf16.mxu0 %v2215_v32 }
  0x31   :  { %2021 = vmatprep.mubr.bf16.mxu1 %v2216_v33 }
  0x37   :  { %1990 = vmatmul.mubr.bf16.gmra.mxu0 %v2217_v34 }
  0x38   :  { %2022 = vmatmul.mubr.bf16.gmra.mxu1 %v2218_v35  ;;  %1993 = vmatprep.mubr.bf16.mxu0 %v2219_v36 }
  0x39   :  { %2025 = vmatprep.mubr.bf16.mxu1 %v2220_v37 }
  0x3f   :  { %1994 = vmatmul.mubr.bf16.gmra.mxu0 %v2221_v38 }
  0x40   :  { %2026 = vmatmul.mubr.bf16.gmra.mxu1 %v2222_v39 }
  0xe7   :  { %v1983_v41 = vpop.f32.mrf.mxu0 }
  0xe8   :  { %v2474_v42 = vadd.f32 %v1983_v41, %v2471_v40  ;;  %v2015_v43 = vpop.f32.mrf.mxu1 }
  0xe9   :  { %v266_v44 = vpop.f32.mrf.mxu0 }
  0xea   :  { %v331_v45 = vmax.f32 %v2474_v42, 0.0  ;;  %v2478_v46 = vadd.f32 %v2471_v40, %v266_v44  ;;  %v507_v47 = vpop.f32.mrf.mxu1 }
  0xeb   :  { %v1984_v48 = vpop.f32.mrf.mxu0 }
  0xec   :  { %v329_v49 = vmax.f32 %v2478_v46, 0.0  ;;  %v2482_v50 = vadd.f32 %v1984_v48, %v2471_v40  ;;  %v2016_v51 = vpop.f32.mrf.mxu1 }
  0xed   :  { %v2484_v52 = vpack.c.bf16 %v2016_v51, %v2015_v43  ;;  %v269_v53 = vpop.f32.mrf.mxu0 }
  0xee   :  { %v332_v54 = vmax.f32 %v2482_v50, 0.0  ;;  %v2488_v55 = vadd.f32 %v2471_v40, %v269_v53  ;;  %v510_v56 = vpop.f32.mrf.mxu1 }
  0xef   :  { %v2490_v57 = vpack.c.bf16 %v510_v56, %v507_v47  ;;  %v1987_v58 = vpop.f32.mrf.mxu0 }
  0xf0   :  { %v330_v59 = vmax.f32 %v2488_v55, 0.0  ;;  %v2494_v60 = vadd.f32 %v1987_v58, %v2471_v40  ;;  %v2019_v61 = vpop.f32.mrf.mxu1 }
  0xf1   :  { %v282_v62 = vpop.f32.mrf.mxu0 }
  0xf2   :  { %v335_v63 = vmax.f32 %v2494_v60, 0.0  ;;  %v2498_v0 = vadd.f32 %v2471_v40, %v282_v62  ;;  %v523_v1 = vpop.f32.mrf.mxu1 }
  0xf3   :  { %v1988_v2 = vpop.f32.mrf.mxu0 }
  0xf4   :  { %v333_v3 = vmax.f32 %v2498_v0, 0.0  ;;  %v2502_v4 = vadd.f32 %v1988_v2, %v2471_v40  ;;  %v2020_v5 = vpop.f32.mrf.mxu1 }
  0xf5   :  { %v2504_v6 = vpack.c.bf16 %v2020_v5, %v2019_v61  ;;  %v285_v7 = vpop.f32.mrf.mxu0 }
  0xf6   :  { %v336_v8 = vmax.f32 %v2502_v4, 0.0  ;;  %v2508_v9 = vadd.f32 %v2471_v40, %v285_v7  ;;  %v526_v10 = vpop.f32.mrf.mxu1 }
  0xf7   :  { %v2510_v11 = vpack.c.bf16 %v526_v10, %v523_v1  ;;  %v1991_v12 = vpop.f32.mrf.mxu0 }
  0xf8   :  { %v334_v13 = vmax.f32 %v2508_v9, 0.0  ;;  %v2514_v14 = vadd.f32 %v1991_v12, %v2471_v40  ;;  %v2023_v15 = vpop.f32.mrf.mxu1 }
  0xf9   :  { %v298_v16 = vpop.f32.mrf.mxu0 }
  0xfa   :  { %v339_v17 = vmax.f32 %v2514_v14, 0.0  ;;  %v2518_v18 = vadd.f32 %v2471_v40, %v298_v16  ;;  %v539_v19 = vpop.f32.mrf.mxu1 }
  0xfb   :  { %v1992_v20 = vpop.f32.mrf.mxu0 }
  0xfc   :  { %v337_v21 = vmax.f32 %v2518_v18, 0.0  ;;  %v2522_v22 = vadd.f32 %v1992_v20, %v2471_v40  ;;  %v2024_v23 = vpop.f32.mrf.mxu1 }
  0xfd   :  { %v575_v24 = vpack.c.bf16 %v2024_v23, %v2023_v15  ;;  %v301_v25 = vpop.f32.mrf.mxu0 }
  0xfe   :  { %v340_v26 = vmax.f32 %v2522_v22, 0.0  ;;  %v2526_v27 = vadd.f32 %v2471_v40, %v301_v25  ;;  %v542_v28 = vpop.f32.mrf.mxu1 }
  0xff   :  { %v574_v29 = vpack.c.bf16 %v542_v28, %v539_v19  ;;  %v1995_v30 = vpop.f32.mrf.mxu0 }
 0x100   :  { %v338_v31 = vmax.f32 %v2526_v27, 0.0  ;;  %v2530_v32 = vadd.f32 %v1995_v30, %v2471_v40  ;;  %v2027_v33 = vpop.f32.mrf.mxu1 }
 0x101   :  { %v314_v34 = vpop.f32.mrf.mxu0 }
 0x102   :  { %v343_v35 = vmax.f32 %v2530_v32, 0.0  ;;  %v2534_v36 = vadd.f32 %v2471_v40, %v314_v34  ;;  %v555_v37 = vpop.f32.mrf.mxu1 }
 0x103   :  { %v1996_v38 = vpop.f32.mrf.mxu0 }
 0x104   :  { %v341_v39 = vmax.f32 %v2534_v36, 0.0  ;;  %v2538_v41 = vadd.f32 %v1996_v38, %v2471_v40  ;;  %v2028_v43 = vpop.f32.mrf.mxu1 }
 0x105   :  { %v577_v44 = vpack.c.bf16 %v2028_v43, %v2027_v33  ;;  %v317_v47 = vpop.f32.mrf.mxu0 }
 0x106   :  { %v344_v48 = vmax.f32 %v2538_v41, 0.0  ;;  %v2542_v51 = vadd.f32 %v2471_v40, %v317_v47  ;;  %v558_v53 = vpop.f32.mrf.mxu1 }
 0x107   :  { %v576_v56 = vpack.c.bf16 %v558_v53, %v555_v37  ;;  %2029 = vmatprep.subr.bf16.mxu0 %v577_v44  ;;  %2165 = vmatprep.subr.bf16.mxu1 %v577_v44 }
 0x108   :  { %v342_v58 = vmax.f32 %v2542_v51, 0.0 }
 0x109   :  { %2275 = dma.done.wait [#allocation4], 1024 }
 0x10a   :  { %2276 = vsyncadd [#allocation4], 4294966272  ;;  %2030 = vmatpush3.bf16.msra.mxu0 %v577_v44  ;;  %2173 = vmatpush3.bf16.msra.mxu1 %v577_v44  ;;  %v2223_v61 = vld [vmem:[#allocation2] sm:$0xff]   ;;  %v2225_v40 = vld [vmem:[#allocation2 + $0x8] sm:$0xff]   ;;  %s2596_s4 = smov 0  }
 0x10b   :  { %2031 = vmatprep.subr.bf16.mxu0 %v576_v56  ;;  %2166 = vmatprep.subr.bf16.mxu1 %v576_v56  ;;  %v2224_v62 = vld [vmem:[#allocation2 + $0x20] sm:$0xff]   ;;  %v2226_v1 = vld [vmem:[#allocation2 + $0x28] sm:$0xff]   ;;  %v2227_v2 = vld [vmem:[#allocation2 + $0x10] sm:$0xff]  }
 0x10c   :  { %2045 = vmatprep.mubr.bf16.mxu0 %v2223_v61  ;;  %2053 = vmatprep.mubr.bf16.mxu1 %v2224_v62  ;;  %v2228_v5 = vld [vmem:[#allocation2 + $0x30] sm:$0xff]   ;;  %v2230_v7 = vld [vmem:[#allocation2 + $0x38] sm:$0xff]  }
 0x10e   :  { %2032 = vmatpush3.bf16.msra.mxu0 %v576_v56  ;;  %2174 = vmatpush3.bf16.msra.mxu1 %v576_v56 }
 0x10f   :  { %2033 = vmatprep.subr.bf16.mxu0 %v575_v24  ;;  %2167 = vmatprep.subr.bf16.mxu1 %v575_v24 }
 0x112   :  { %2034 = vmatpush3.bf16.msra.mxu0 %v575_v24  ;;  %2175 = vmatpush3.bf16.msra.mxu1 %v575_v24 }
 0x113   :  { %2035 = vmatprep.subr.bf16.mxu0 %v574_v29  ;;  %2168 = vmatprep.subr.bf16.mxu1 %v574_v29 }
 0x116   :  { %2036 = vmatpush3.bf16.msra.mxu0 %v574_v29  ;;  %2176 = vmatpush3.bf16.msra.mxu1 %v574_v29 }
 0x117   :  { %2037 = vmatprep.subr.bf16.mxu0 %v2504_v6  ;;  %2169 = vmatprep.subr.bf16.mxu1 %v2504_v6 }
 0x11a   :  { %2038 = vmatpush3.bf16.msra.mxu0 %v2504_v6  ;;  %2177 = vmatpush3.bf16.msra.mxu1 %v2504_v6  ;;  %v2229_v6 = vld [vmem:[#allocation2 + $0x18] sm:$0xff]  }
 0x11b   :  { %2039 = vmatprep.subr.bf16.mxu0 %v2510_v11  ;;  %2170 = vmatprep.subr.bf16.mxu1 %v2510_v11 }
 0x11e   :  { %2040 = vmatpush3.bf16.msra.mxu0 %v2510_v11  ;;  %2178 = vmatpush3.bf16.msra.mxu1 %v2510_v11 }
 0x11f   :  { %2041 = vmatprep.subr.bf16.mxu0 %v2484_v52  ;;  %2171 = vmatprep.subr.bf16.mxu1 %v2484_v52 }
 0x122   :  { %2042 = vmatpush3.bf16.msra.mxu0 %v2484_v52  ;;  %2179 = vmatpush3.bf16.msra.mxu1 %v2484_v52  ;;  %v1653_v52 = vld [vmem:[%s2651_s6] ss:$0 sm:$0xff] }
 0x123   :  { %2043 = vmatprep.subr.bf16.mxu0 %v2490_v57  ;;  %2172 = vmatprep.subr.bf16.mxu1 %v2490_v57 }
 0x126   :  { %2044 = vmatpush3.bf16.msra.mxu0 %v2490_v57  ;;  %2180 = vmatpush3.bf16.msra.mxu1 %v2490_v57 }
 0x129   :  { %2046 = vmatmul.mubr.bf16.vlgmr.msra.gmra.mxu0 %v2225_v40  ;;  %2054 = vmatmul.mubr.bf16.vlgmr.msra.gmra.mxu1 %v2226_v1 }
 0x12a   :  { %2049 = vmatprep.mubr.bf16.mxu0 %v2227_v2  ;;  %2057 = vmatprep.mubr.bf16.mxu1 %v2228_v5 }
 0x131   :  { %2050 = vmatmul.mubr.bf16.gmra.mxu0 %v2229_v6  ;;  %2058 = vmatmul.mubr.bf16.gmra.mxu1 %v2230_v7 }
 0x1e9   :  { %v2047_v10 = vpop.f32.mrf.mxu0  ;;  %v2055_v11 = vpop.f32.mrf.mxu1 }
 0x1ea   :  { %v696_v12 = vadd.f32 %v2047_v10, %v1653_v52  ;;  %v728_v15 = vadd.f32 %v2055_v11, %v1653_v52 }
 0x1eb   :  { %v687_v16 = vpop.f32.mrf.mxu0  ;;  %v719_v57 = vpop.f32.mrf.mxu1 }
 0x1ec   :  { %v688_v19 = vadd.f32 %v1653_v52, %v687_v16  ;;  %v720_v20 = vadd.f32 %v1653_v52, %v719_v57  ;;  %v752_v25 = vmax.f32 %v696_v12, 0.0  ;;  %v760_v28 = vmax.f32 %v728_v15, 0.0 }
 0x1ed   :  { %v2048_v23 = vpop.f32.mrf.mxu0  ;;  %v2056_v24 = vpop.f32.mrf.mxu1 }
 0x1ee   :  { %v699_v29 = vadd.f32 %v2048_v23, %v1653_v52  ;;  %v731_v30 = vadd.f32 %v2056_v24, %v1653_v52  ;;  %v750_v37 = vmax.f32 %v688_v19, 0.0  ;;  %v758_v38 = vmax.f32 %v720_v20, 0.0 }
 0x1ef   :  { %v690_v33 = vpop.f32.mrf.mxu0  ;;  %v722_v34 = vpop.f32.mrf.mxu1  ;;  %v768_v62 = vadd.f32 %v752_v25, %v331_v45  ;;  %v776_v40 = vadd.f32 %v760_v28, %v339_v17 }
 0x1f0   :  { %v691_v43 = vadd.f32 %v1653_v52, %v690_v33  ;;  %v723_v44 = vadd.f32 %v1653_v52, %v722_v34  ;;  %v753_v47 = vmax.f32 %v699_v29, 0.0  ;;  %v761_v53 = vmax.f32 %v731_v30, 0.0 }
 0x1f1   :  { %v2051_v56 = vpop.f32.mrf.mxu0  ;;  %v2059_v61 = vpop.f32.mrf.mxu1  ;;  %v766_v15 = vadd.f32 %v750_v37, %v329_v49  ;;  %v774_v42 = vadd.f32 %v758_v38, %v337_v21 }
 0x1f2   :  { %v751_v1 = vmax.f32 %v691_v43, 0.0  ;;  %v759_v2 = vmax.f32 %v723_v44, 0.0  ;;  %v769_v5 = vadd.f32 %v753_v47, %v332_v54  ;;  %v777_v6 = vadd.f32 %v761_v53, %v340_v26 }
 0x1f3   :  { %v712_v7 = vadd.f32 %v2051_v56, %v1653_v52  ;;  %v744_v10 = vadd.f32 %v2059_v61, %v1653_v52  ;;  %v703_v11 = vpop.f32.mrf.mxu0  ;;  %v735_v12 = vpop.f32.mrf.mxu1 }
 0x1f4   :  { %v767_v45 = vadd.f32 %v751_v1, %v330_v59  ;;  %v775_v50 = vadd.f32 %v759_v2, %v338_v31  ;;  %v1781_v54 = vpack.c.bf16 %v769_v5, %v768_v62  ;;  %v1801_v14 = vpack.c.bf16 %v777_v6, %v776_v40 }
 0x1f5   :  { %v704_v17 = vadd.f32 %v1653_v52, %v703_v11  ;;  %v736_v22 = vadd.f32 %v1653_v52, %v735_v12  ;;  %v2052_v26 = vpop.f32.mrf.mxu0  ;;  %v2060_v16 = vpop.f32.mrf.mxu1  ;;  %v756_v46 = vmax.f32 %v712_v7, 0.0  ;;  %v764_v49 = vmax.f32 %v744_v10, 0.0 }
 0x1f6   :  { %v1776_v57 = vpack.c.bf16 %v767_v45, %v766_v15  ;;  %v1796_v19 = vpack.c.bf16 %v775_v50, %v774_v42  ;;  %1853 = vst [vmem:[#allocation3 + $0x8] sm:$0xff] %v1781_v54   ;;  %1857 = vst [vmem:[#allocation3 + $0x28] sm:$0xff] %v1801_v14   ;;  %v715_v18 = vadd.f32 %v2052_v26, %v1653_v52 }
 0x1f7   :  { %v747_v21 = vadd.f32 %v2060_v16, %v1653_v52  ;;  %v706_v20 = vpop.f32.mrf.mxu0  ;;  %v738_v55 = vpop.f32.mrf.mxu1  ;;  %v754_v59 = vmax.f32 %v704_v17, 0.0  ;;  %v762_v27 = vmax.f32 %v736_v22, 0.0  ;;  %v772_v30 = vadd.f32 %v756_v46, %v335_v63 }
 0x1f8   :  { %1777 = vst [vmem:[#allocation3] sm:$0xff] %v1776_v57   ;;  %1856 = vst [vmem:[#allocation3 + $0x20] sm:$0xff] %v1796_v19   ;;  %v707_v31 = vadd.f32 %v1653_v52, %v706_v20  ;;  %v739_v23 = vadd.f32 %v1653_v52, %v738_v55  ;;  %v757_v24 = vmax.f32 %v715_v18, 0.0  ;;  %v780_v33 = vadd.f32 %v764_v49, %v343_v35 }
 0x1f9   :  { %v765_v25 = vmax.f32 %v747_v21, 0.0  ;;  %v770_v38 = vadd.f32 %v754_v59, %v333_v3  ;;  %v778_v52 = vadd.f32 %v762_v27, %v341_v39 }
 0x1fa   :  { %v755_v28 = vmax.f32 %v707_v31, 0.0  ;;  %v763_v29 = vmax.f32 %v739_v23, 0.0  ;;  %v773_v34 = vadd.f32 %v757_v24, %v336_v8 }
 0x1fb   :  { %v781_v37 = vadd.f32 %v765_v25, %v344_v48 }
 0x1fc   :  { %v771_v43 = vadd.f32 %v755_v28, %v334_v13  ;;  %v779_v60 = vadd.f32 %v763_v29, %v342_v58  ;;  %v1791_v63 = vpack.c.bf16 %v773_v34, %v772_v30 }
 0x1fd   :  { %v1811_v32 = vpack.c.bf16 %v781_v37, %v780_v33 }
 0x1fe   :  { %v1786_v35 = vpack.c.bf16 %v771_v43, %v770_v38  ;;  %v1806_v4 = vpack.c.bf16 %v779_v60, %v778_v52  ;;  %1855 = vst [vmem:[#allocation3 + $0x18] sm:$0xff] %v1791_v63  }
 0x1ff   :  { %1859 = vst [vmem:[#allocation3 + $0x38] sm:$0xff] %v1811_v32  }
 0x200   :  { %1854 = vst [vmem:[#allocation3 + $0x10] sm:$0xff] %v1786_v35   ;;  %1858 = vst [vmem:[#allocation3 + $0x30] sm:$0xff] %v1806_v4  }
 0x201 LB: > { %v2239_v0 = vld [vmem:[#allocation3] sm:$0xff]   ;;  %s1756_s6 = sshll.u32 %s2279_s4, 6  ;;  %v2240_v51 = vld [vmem:[#allocation3 + $0x8] sm:$0xff]   ;;  %v2249_v20 = vld [vmem:[#allocation2 + $0x10] sm:$0xff]   ;;  %s1120_s28 = scalar_lea.vmem %s2653_s8, %s2279_s4  ;;  %s2279_s4 = sphi %s2596_s4, %s867_s4  }
 0x202   : > { %2077 = vmatprep.mubr.bf16.mxu0 %v2239_v0  ;;  %s886_s0 = scalar_lea.vmem %s2652_s7, %s1756_s6  ;;  %v2243_v47 = vld [vmem:[#allocation3 + $0x20] sm:$0xff]   ;;  %v2244_v53 = vld [vmem:[#allocation3 + $0x28] sm:$0xff]   ;;  %v2250_v55 = vld [vmem:[#allocation2 + $0x18] sm:$0xff]   ;;  %s867_s4 = sadd.s32 1, %s2279_s4  }
 0x203   : > { %v2231_v3 = vld [vmem:[%s886_s0 + $0x38] sm:$0xff]   ;;  %v2232_v8 = vld [vmem:[%s886_s0 + $0x30] sm:$0xff]   ;;  %v2233_v9 = vld [vmem:[%s886_s0 + $0x28] sm:$0xff]   ;;  %p864_p0 = scmp.ge.s32.totalorder %s867_s4, 2  }
 0x204   : > { %2061 = vmatprep.subr.bf16.mxu0 %v2231_v3  ;;  %v2234_v13 = vld [vmem:[%s886_s0 + $0x20] sm:$0xff]   ;;  %v2235_v36 = vld [vmem:[%s886_s0 + $0x18] sm:$0xff]   ;;  %v2236_v39 = vld [vmem:[%s886_s0 + $0x10] sm:$0xff]   ;;  %vm2282_vm0 = vmmov (%p864_p0), 0  }
 0x205   : > { %2062 = vmatpush3.bf16.msra.mxu0 %v2231_v3  ;;  %v2237_v41 = vld [vmem:[%s886_s0 + $0x8] sm:$0xff]   ;;  %v2238_v48 = vld [vmem:[%s886_s0] sm:$0xff]   ;;  %v2242_v44 = vld [vmem:[#allocation3 + $0x18] sm:$0xff]  }
 0x206   : > { %2063 = vmatprep.subr.bf16.mxu0 %v2232_v8  ;;  %v2246_v61 = vld [vmem:[#allocation3 + $0x38] sm:$0xff]   ;;  %v2247_v62 = vld [vmem:[#allocation2] sm:$0xff]   ;;  %v2248_v21 = vld [vmem:[#allocation2 + $0x8] sm:$0xff]  }
 0x207   : > { %v2241_v58 = vld [vmem:[#allocation3 + $0x10] sm:$0xff]   ;;  %2109 = vmatprep.mubr.bf16.mxu1 %v2247_v62  ;;  %v2251_v59 = vld [vmem:[#allocation2 + $0x20] sm:$0xff]   ;;  %v2252_v27 = vld [vmem:[#allocation2 + $0x28] sm:$0xff]  }
 0x208   : > { %v2245_v56 = vld [vmem:[#allocation3 + $0x30] sm:$0xff]   ;;  %v2254_v23 = vld [vmem:[#allocation2 + $0x38] sm:$0xff]   ;;  %v1696_v25 = vld [vmem:[%s1120_s28] ss:$0 sm:$0xff] }
 0x209   : > { %2064 = vmatpush3.bf16.msra.mxu0 %v2232_v8  ;;  %v2253_v31 = vld [vmem:[#allocation2 + $0x30] sm:$0xff]  }
 0x20a   : > { %2065 = vmatprep.subr.bf16.mxu0 %v2233_v9 }
 0x20d   : > { %2066 = vmatpush3.bf16.msra.mxu0 %v2233_v9 }
 0x20e   : > { %2067 = vmatprep.subr.bf16.mxu0 %v2234_v13 }
 0x211   : > { %2068 = vmatpush3.bf16.msra.mxu0 %v2234_v13 }
 0x212   : > { %2069 = vmatprep.subr.bf16.mxu0 %v2235_v36 }
 0x215   : > { %2070 = vmatpush3.bf16.msra.mxu0 %v2235_v36 }
 0x216   : > { %2071 = vmatprep.subr.bf16.mxu0 %v2236_v39 }
 0x219   : > { %2072 = vmatpush3.bf16.msra.mxu0 %v2236_v39 }
 0x21a   : > { %2073 = vmatprep.subr.bf16.mxu0 %v2237_v41 }
 0x21d   : > { %2074 = vmatpush3.bf16.msra.mxu0 %v2237_v41 }
 0x21e   : > { %2075 = vmatprep.subr.bf16.mxu0 %v2238_v48 }
 0x221   : > { %2076 = vmatpush3.bf16.msra.mxu0 %v2238_v48 }
 0x224   : > { %2078 = vmatmul.mubr.bf16.vlgmr.msra.gmra.mxu0 %v2240_v51 }
 0x225   : > { %2081 = vmatprep.mubr.bf16.mxu0 %v2241_v58 }
 0x22c   : > { %2082 = vmatmul.mubr.bf16.gmra.mxu0 %v2242_v44 }
 0x22d   : > { %2085 = vmatprep.mubr.bf16.mxu0 %v2243_v47 }
 0x234   : > { %2086 = vmatmul.mubr.bf16.gmra.mxu0 %v2244_v53 }
 0x235   : > { %2089 = vmatprep.mubr.bf16.mxu0 %v2245_v56 }
 0x23c   : > { %2090 = vmatmul.mubr.bf16.gmra.mxu0 %v2246_v61 }
 0x2e4   : > { %v2079_v40 = vpop.f32.mrf.mxu0 }
 0x2e6   : > { %v1033_v1 = vpop.f32.mrf.mxu0 }
 0x2e8   : > { %v2080_v2 = vpop.f32.mrf.mxu0 }
 0x2e9   : > { %v1113_v49 = vpack.c.bf16 %v2080_v2, %v2079_v40 }
 0x2ea   : > { %v1036_v5 = vpop.f32.mrf.mxu0 }
 0x2eb   : > { %v1112_v18 = vpack.c.bf16 %v1036_v5, %v1033_v1 }
 0x2ec   : > { %v2083_v6 = vpop.f32.mrf.mxu0 }
 0x2ee   : > { %v1049_v7 = vpop.f32.mrf.mxu0 }
 0x2f0   : > { %v2084_v10 = vpop.f32.mrf.mxu0 }
 0x2f1   : > { %v1115_v19 = vpack.c.bf16 %v2084_v10, %v2083_v6 }
 0x2f2   : > { %v1052_v11 = vpop.f32.mrf.mxu0 }
 0x2f3   : > { %v1114_v46 = vpack.c.bf16 %v1052_v11, %v1049_v7 }
 0x2f4   : > { %v2087_v12 = vpop.f32.mrf.mxu0 }
 0x2f6   : > { %v1065_v15 = vpop.f32.mrf.mxu0 }
 0x2f8   : > { %v2088_v42 = vpop.f32.mrf.mxu0 }
 0x2f9   : > { %v1117_v16 = vpack.c.bf16 %v2088_v42, %v2087_v12 }
 0x2fa   : > { %v1068_v45 = vpop.f32.mrf.mxu0 }
 0x2fb   : > { %v1116_v57 = vpack.c.bf16 %v1068_v45, %v1065_v15 }
 0x2fc   : > { %v2091_v50 = vpop.f32.mrf.mxu0 }
 0x2fe   : > { %v1081_v54 = vpop.f32.mrf.mxu0 }
 0x300   : > { %v2092_v14 = vpop.f32.mrf.mxu0 }
 0x301   : > { %v1119_v17 = vpack.c.bf16 %v2092_v14, %v2091_v50 }
 0x302   : > { %v1084_v22 = vpop.f32.mrf.mxu0 }
 0x303   : > { %v1118_v26 = vpack.c.bf16 %v1084_v22, %v1081_v54  ;;  %2093 = vmatprep.subr.bf16.mxu1 %v1119_v17 }
 0x304   : > { %2094 = vmatpush3.bf16.msra.mxu1 %v1119_v17 }
 0x305   : > { %2095 = vmatprep.subr.bf16.mxu1 %v1118_v26 }
 0x308   : > { %2096 = vmatpush3.bf16.msra.mxu1 %v1118_v26 }
 0x309   : > { %2097 = vmatprep.subr.bf16.mxu1 %v1117_v16 }
 0x30c   : > { %2098 = vmatpush3.bf16.msra.mxu1 %v1117_v16 }
 0x30d   : > { %2099 = vmatprep.subr.bf16.mxu1 %v1116_v57 }
 0x310   : > { %2100 = vmatpush3.bf16.msra.mxu1 %v1116_v57 }
 0x311   : > { %2101 = vmatprep.subr.bf16.mxu1 %v1115_v19 }
 0x314   : > { %2102 = vmatpush3.bf16.msra.mxu1 %v1115_v19 }
 0x315   : > { %2103 = vmatprep.subr.bf16.mxu1 %v1114_v46 }
 0x318   : > { %2104 = vmatpush3.bf16.msra.mxu1 %v1114_v46 }
 0x319   : > { %2105 = vmatprep.subr.bf16.mxu1 %v1113_v49 }
 0x31c   : > { %2106 = vmatpush3.bf16.msra.mxu1 %v1113_v49 }
 0x31d   : > { %2107 = vmatprep.subr.bf16.mxu1 %v1112_v18 }
 0x320   : > { %2108 = vmatpush3.bf16.msra.mxu1 %v1112_v18 }
 0x323   : > { %2110 = vmatmul.mubr.bf16.vlgmr.msra.gmra.mxu1 %v2248_v21 }
 0x324   : > { %2113 = vmatprep.mubr.bf16.mxu1 %v2249_v20  ;;  %v2281_v20 = vmov (%p864_p0), 0.0  }
 0x325   :  { %2125 = vmatprep.subr.bf16.mxu0 (%p864_p0), %v2281_v20  ;;  %2145 = vmatprep.subr.bf16.mxu1 (%p864_p0), %v2281_v20 }
 0x326   :  { %2141 = vmatprep.mubr.msk.bf16.mxu0 (%p864_p0), %vm2282_vm0, %v2281_v20 }
 0x32b   : > { %2114 = vmatmul.mubr.bf16.gmra.mxu1 %v2250_v55 }
 0x32c   : > { %2117 = vmatprep.mubr.bf16.mxu1 %v2251_v59 }
 0x333   : > { %2118 = vmatmul.mubr.bf16.gmra.mxu1 %v2252_v27  ;;  %v2263_v27 = vld [vmem:[%s2655_s10 + $0x38] sm:$0xff] (%p864_p0)  }
 0x334   : > { %2121 = vmatprep.mubr.bf16.mxu1 %v2253_v31  ;;  %2146 = vmatpush3.bf16.msra.mxu1 (%p864_p0), %v2263_v27 }
 0x335   :  { %2147 = vmatprep.subr.bf16.mxu1 (%p864_p0), %v2281_v20 }
 0x33b   : > { %2122 = vmatmul.mubr.bf16.gmra.mxu1 %v2254_v23  ;;  %v2264_v23 = vld [vmem:[%s2655_s10 + $0x30] sm:$0xff] (%p864_p0)  }
 0x33c   :  { %2161 = vmatprep.mubr.msk.bf16.mxu1 (%p864_p0), %vm2282_vm0, %v2281_v20  ;;  %2148 = vmatpush3.bf16.msra.mxu1 (%p864_p0), %v2264_v23 }
 0x33d   :  { %2149 = vmatprep.subr.bf16.mxu1 (%p864_p0), %v2281_v20 }
 0x3e3   : > { %v2111_v24 = vpop.f32.mrf.mxu1 }
 0x3e4   : > { %v1219_v29 = vadd.f32 %v2111_v24, %v1696_v25 }
 0x3e5   : > { %v1210_v28 = vpop.f32.mrf.mxu1 }
 0x3e6   : > { %v1211_v33 = vadd.f32 %v1696_v25, %v1210_v28  ;;  %v1275_v38 = vmax.f32 %v1219_v29, 0.0  ;;  %v2266_v29 = vld [vmem:[%s2655_s10 + $0x20] sm:$0xff] (%p864_p0)  }
 0x3e7   : > { %v2112_v30 = vpop.f32.mrf.mxu1 }
 0x3e8   : > { %v1222_v34 = vadd.f32 %v2112_v30, %v1696_v25  ;;  %v1273_v63 = vmax.f32 %v1211_v33, 0.0  ;;  %v2267_v33 = vld [vmem:[%s2655_s10 + $0x18] sm:$0xff] (%p864_p0)  }
 0x3e9   : > { %v1213_v37 = vpop.f32.mrf.mxu1 }
 0x3ea   : > { %v1276_v52 = vmax.f32 %v1222_v34, 0.0  ;;  %v1214_v43 = vadd.f32 %v1696_v25, %v1213_v37  ;;  %v2268_v37 = vld [vmem:[%s2655_s10 + $0x10] sm:$0xff] (%p864_p0)  }
 0x3eb   : > { %v2115_v60 = vpop.f32.mrf.mxu1 }
 0x3ec   : > { %v1821_v32 = vpack.c.bf16 %v1276_v52, %v1275_v38  ;;  %v1274_v35 = vmax.f32 %v1214_v43, 0.0  ;;  %v1235_v3 = vadd.f32 %v2115_v60, %v1696_v25  ;;  %v1369_v38 = vld [vmem:[%s2654_s9] sm:$0xf] (%p864_p0)  ;;  %v2269_v52 = vld [vmem:[%s2655_s10 + $0x8] sm:$0xff] (%p864_p0)  }
 0x3ed   : > { %v1226_v4 = vpop.f32.mrf.mxu1  ;;  %v2270_v43 = vld [vmem:[%s2655_s10] sm:$0xff] (%p864_p0)  }
 0x3ee   : > { %1860 = vst [vmem:[#allocation3 + $0x8] sm:$0xff] %v1821_v32   ;;  %v1816_v0 = vpack.c.bf16 %v1274_v35, %v1273_v63  ;;  %v1227_v9 = vadd.f32 %v1696_v25, %v1226_v4  ;;  %v1279_v39 = vmax.f32 %v1235_v3, 0.0 }
 0x3ef   : > { %v2116_v8 = vpop.f32.mrf.mxu1 }
 0x3f0   : > { %1817 = vst [vmem:[#allocation3] sm:$0xff] %v1816_v0   ;;  %v1238_v13 = vadd.f32 %v2116_v8, %v1696_v25  ;;  %v1277_v58 = vmax.f32 %v1227_v9, 0.0  ;;  %v1729_v0 = vld [vmem:[%s2656_s11] ss:$0 sm:$0xff] (%p864_p0) }
 0x3f1   : > { %v1229_v36 = vpop.f32.mrf.mxu1 }
 0x3f2   : > { %v1280_v41 = vmax.f32 %v1238_v13, 0.0  ;;  %v1230_v48 = vadd.f32 %v1696_v25, %v1229_v36 }
 0x3f3   : > { %v2119_v51 = vpop.f32.mrf.mxu1 }
 0x3f4   : > { %v1831_v44 = vpack.c.bf16 %v1280_v41, %v1279_v39  ;;  %v1278_v47 = vmax.f32 %v1230_v48, 0.0  ;;  %v1251_v61 = vadd.f32 %v2119_v51, %v1696_v25 }
 0x3f5   : > { %v1242_v53 = vpop.f32.mrf.mxu1  ;;  %v2261_v30 = vld [vmem:[#allocation3 + $0x8] sm:$0xff] (%p864_p0)  }
 0x3f6   : > { %1862 = vst [vmem:[#allocation3 + $0x18] sm:$0xff] %v1831_v44   ;;  %v1826_v56 = vpack.c.bf16 %v1278_v47, %v1277_v58  ;;  %v1243_v40 = vadd.f32 %v1696_v25, %v1242_v53  ;;  %v1283_v5 = vmax.f32 %v1251_v61, 0.0 }
 0x3f7   : > { %v2120_v62 = vpop.f32.mrf.mxu1  ;;  %v2262_v34 = vld [vmem:[#allocation3] sm:$0xff] (%p864_p0)  }
 0x3f8   : > { %1861 = vst [vmem:[#allocation3 + $0x10] sm:$0xff] %v1826_v56   ;;  %v1254_v1 = vadd.f32 %v2120_v62, %v1696_v25  ;;  %v1281_v11 = vmax.f32 %v1243_v40, 0.0 }
 0x3f9   : > { %v1245_v2 = vpop.f32.mrf.mxu1 }
 0x3fa   : > { %v1284_v6 = vmax.f32 %v1254_v1, 0.0  ;;  %v1246_v7 = vadd.f32 %v1696_v25, %v1245_v2 }
 0x3fb   : > { %v2123_v10 = vpop.f32.mrf.mxu1 }
 0x3fc   : > { %v1841_v12 = vpack.c.bf16 %v1284_v6, %v1283_v5  ;;  %v1282_v15 = vmax.f32 %v1246_v7, 0.0  ;;  %v1267_v50 = vadd.f32 %v2123_v10, %v1696_v25 }
 0x3fd   : > { %v1258_v42 = vpop.f32.mrf.mxu1  ;;  %v2259_v24 = vld [vmem:[#allocation3 + $0x18] sm:$0xff] (%p864_p0)  }
 0x3fe   : > { %1864 = vst [vmem:[#allocation3 + $0x28] sm:$0xff] %v1841_v12   ;;  %v1836_v45 = vpack.c.bf16 %v1282_v15, %v1281_v11  ;;  %v1259_v14 = vadd.f32 %v1696_v25, %v1258_v42  ;;  %v1287_v26 = vmax.f32 %v1267_v50, 0.0 }
 0x3ff   : > { %v2124_v54 = vpop.f32.mrf.mxu1  ;;  %v2260_v28 = vld [vmem:[#allocation3 + $0x10] sm:$0xff] (%p864_p0)  }
 0x400   : > { %1863 = vst [vmem:[#allocation3 + $0x20] sm:$0xff] %v1836_v45   ;;  %v1270_v17 = vadd.f32 %v2124_v54, %v1696_v25  ;;  %v1285_v19 = vmax.f32 %v1259_v14, 0.0 }
 0x401   : > { %v1261_v22 = vpop.f32.mrf.mxu1 }
 0x402   : > { %v1288_v16 = vmax.f32 %v1270_v17, 0.0  ;;  %v1262_v57 = vadd.f32 %v1696_v25, %v1261_v22  ;;  %v2265_v25 = vld [vmem:[%s2655_s10 + $0x28] sm:$0xff] (%p864_p0)  }
 0x403   :  { %2150 = vmatpush3.bf16.msra.mxu1 (%p864_p0), %v2265_v25 }
 0x404   : > { %v1851_v46 = vpack.c.bf16 %v1288_v16, %v1287_v26  ;;  %v1286_v49 = vmax.f32 %v1262_v57, 0.0  ;;  %866 = sbr.rel (!%p864_p0) target bundleno = 513 (0x201), region = 116  ;;  %2151 = vmatprep.subr.bf16.mxu1 (%p864_p0), %v2281_v20 }
 0x405   :  { %v2257_v59 = vld [vmem:[#allocation3 + $0x28] sm:$0xff] (%p864_p0)  }
 0x406   : > { %1866 = vst [vmem:[#allocation3 + $0x38] sm:$0xff] %v1851_v46   ;;  %v1846_v18 = vpack.c.bf16 %v1286_v49, %v1285_v19 }
 0x407   :  { %v2258_v31 = vld [vmem:[#allocation3 + $0x20] sm:$0xff] (%p864_p0)   ;;  %2152 = vmatpush3.bf16.msra.mxu1 (%p864_p0), %v2266_v29 }
 0x408   : > { %1865 = vst [vmem:[#allocation3 + $0x30] sm:$0xff] %v1846_v18   ;;  %2153 = vmatprep.subr.bf16.mxu1 (%p864_p0), %v2281_v20 }
 0x40b   :  { %2154 = vmatpush3.bf16.msra.mxu1 %v2267_v33 }
 0x40c   :  { %2155 = vmatprep.subr.bf16.mxu1 %v2281_v20 }
 0x40d   :  { %v2255_v21 = vld [vmem:[#allocation3 + $0x38] sm:$0xff]  }
 0x40e   :  { %2126 = vmatpush3.bf16.msra.mxu0 %v2255_v21 }
 0x40f   :  { %v2256_v55 = vld [vmem:[#allocation3 + $0x30] sm:$0xff]   ;;  %2127 = vmatprep.subr.bf16.mxu0 %v2281_v20  ;;  %2156 = vmatpush3.bf16.msra.mxu1 %v2268_v37 }
 0x410   :  { %2157 = vmatprep.subr.bf16.mxu1 %v2281_v20 }
 0x412   :  { %2128 = vmatpush3.bf16.msra.mxu0 %v2256_v55 }
 0x413   :  { %2129 = vmatprep.subr.bf16.mxu0 %v2281_v20  ;;  %2158 = vmatpush3.bf16.msra.mxu1 %v2269_v52 }
 0x414   :  { %2159 = vmatprep.subr.bf16.mxu1 %v2281_v20 }
 0x416   :  { %2130 = vmatpush3.bf16.msra.mxu0 %v2257_v59 }
 0x417   :  { %2131 = vmatprep.subr.bf16.mxu0 %v2281_v20  ;;  %2160 = vmatpush3.bf16.msra.mxu1 %v2270_v43 }
 0x41a   :  { %2132 = vmatpush3.bf16.msra.mxu0 %v2258_v31 }
 0x41b   :  { %2133 = vmatprep.subr.bf16.mxu0 %v2281_v20 }
 0x41e   :  { %2134 = vmatpush3.bf16.msra.mxu0 %v2259_v24 }
 0x41f   :  { %2135 = vmatprep.subr.bf16.mxu0 %v2281_v20 }
 0x422   :  { %2136 = vmatpush3.bf16.msra.mxu0 %v2260_v28 }
 0x423   :  { %2137 = vmatprep.subr.bf16.mxu0 %v2281_v20 }
 0x426   :  { %2138 = vmatpush3.bf16.msra.mxu0 %v2261_v30 }
 0x427   :  { %2139 = vmatprep.subr.bf16.mxu0 %v2281_v20 }
 0x42a   :  { %2140 = vmatpush3.bf16.msra.mxu0 %v2262_v34 }
 0x42d   :  { %2142 = vmatmul.mubr.bf16.vlgmr.msra.gmra.mxu0 %v1369_v38 }
 0x4ed   :  { %v1468_v60 = vpop.f32.mrf.mxu0 }
 0x4ee   :  { %v1474_v63 = vpack.c.bf16 %v1468_v60, %v1468_v60 }
 0x4ef   :  { %v2143_v32 = vpop.f32.mrf.mxu0 }
 0x4f0   :  { %2162 = vmatmul.mubr.bf16.vlgmr.msra.gmra.mxu1 %v1474_v63 }
 0x4f1   :  { %v1471_v35 = vpop.f32.mrf.mxu0 }
 0x4f3   :  { %v2144_v4 = vpop.f32.mrf.mxu0 }
 0x5b0   :  { %v1580_v3 = vpop.f32.mrf.mxu1 }
 0x5b1   :  { %v1581_v8 = vadd.f32 %v1729_v0, %v1580_v3 }
 0x5b2   :  { %v2163_v9 = vpop.f32.mrf.mxu1 }
 0x5b3   :  { %1586 = vst [vmem:[%s2657_s12] sm:$0xff] %v1581_v8 }
 0x5b4   :  { %v1583_v13 = vpop.f32.mrf.mxu1 }
 0x5b6   :  { %v2164_v36 = vpop.f32.mrf.mxu1 }
 0x5b7   :  { %1591 = vsyncmov [#allocation4] }
 0x5ba   :  { %s1592_s10 = vpop.sfrf %1591 }
 0x5bb   :  { %p1738_p1 = scmp.ne.s32.totalorder %s1592_s10, 0 }
 0x5bd   :  { %1596 = shalt.err (%p1738_p1)  }
 0x5be   :  { %1598 = vsyncmov [#allocation4 + $0x1] }
 0x5c1   :  { %s1599_s24 = vpop.sfrf %1598 }
 0x5c2   :  { %p1739_p2 = scmp.ne.s32.totalorder %s1599_s24, 0 }
 0x5c4   :  { %1603 = shalt.err (%p1739_p2)  }

</bundles_post_ra>
